<compile_context>
chip_gen: v5e
topology: v5e:2x2
jax: 0.10.0
libtpu: 0.0.40
codegen_flags: <defaults>
</compile_context>

<pallas_src>
import functools

import jax
import jax.numpy as jnp
from jax import lax
from jax.experimental import pallas as pl
from jax.experimental.pallas import tpu as pltpu

LANE = 128     # TPU lane width: slab lane dim and output lane dim.
SUBLANE = 8    # f32 sublane tile.


def _round_up(n, m):
    return ((n + m - 1) // m) * m


def _qnet_kernel(x_ref, slab_ref, o_ref, *, mc_out, d_in, slab_w,
                 row_w1, row_b1, row_w2, row_b2):
    """Fused QNet forward on one VMEM-resident block.

    slab layout (all regions 128 lanes wide, sublane-offset multiple of 8):
      rows [row_w1, row_w1+d_in)   : [W_mc | W_lc]^T  (in, hid) zero-padded
      row   row_b1                 : [b_mc | b_lc]    zero-padded
      rows [row_w2, row_w2+slab_w) : W_cc^T           (hid, out) zero-padded
      row   row_b2                 : b_cc             zero-padded
    """
    # Static, tile-aligned views into the packed parameter slab.
    w1 = slab_ref[row_w1:row_w1 + d_in, :]       # (d_in, 128)
    b1 = slab_ref[row_b1:row_b1 + 1, :]          # (1, 128)
    w2 = slab_ref[row_w2:row_w2 + slab_w, :]     # (128, 128)
    b2 = slab_ref[row_b2:row_b2 + 1, :]          # (1, 128)

    x = x_ref[...]

    # One MXU push covers both branches: h lanes [0, mc_out) are the mc
    # pre-activations, lanes [mc_out, hid) are the lc pre-activations.
    h = jnp.dot(x, w1, preferred_element_type=jnp.float32) + b1

    # relu on mc lanes, tanh on the rest (padded lanes are tanh(0)=0, and the
    # matching rows of w2 are zero, so they contribute nothing downstream).
    lane = lax.broadcasted_iota(jnp.int32, h.shape, dimension=1)
    h = jnp.where(lane < mc_out, jnp.maximum(h, 0.0), jnp.tanh(h))

    # cc(concat(m, l)) == h @ W_cc^T + b_cc  (column order already matches).
    z = jnp.dot(h, w2, preferred_element_type=jnp.float32) + b2

    # Lane-dense unmasked store; padded lanes hold sigmoid(0)=0.5.
    o_ref[...] = jax.nn.sigmoid(z).astype(o_ref.dtype)


def pack_qnet_params(w_mc, b_mc, w_lc, b_lc, w_cc, b_cc, lane=LANE):
    """One-time parameter preprocessing (outside the per-call hot path).

    Builds a single tile-aligned f32 slab containing:
      * [W_mc; W_lc] stacked along out_features, transposed to (in, hid),
      * the stacked bias,
      * W_cc transposed to (hid, out),
      * b_cc,
    each zero-padded to 128 lanes and starting at a sublane offset that is a
    multiple of 8.
    """
    d_m, d_in = w_mc.shape
    d_l = w_lc.shape[0]
    d_hid = d_m + d_l
    d_out = w_cc.shape[0]
    assert w_lc.shape[1] == d_in and w_cc.shape[1] == d_hid

    slab_w = max(lane, _round_up(d_hid, lane), _round_up(d_out, lane))

    in_rows = _round_up(d_in, SUBLANE)
    row_w1 = 0
    row_b1 = in_rows
    row_w2 = in_rows + SUBLANE
    row_b2 = row_w2 + slab_w
    total_rows = row_b2 + SUBLANE

    w1t = jnp.concatenate([w_mc, w_lc], axis=0).T          # (d_in, d_hid)
    b1 = jnp.concatenate([b_mc, b_lc])                      # (d_hid,)

    slab = jnp.zeros((total_rows, slab_w), jnp.float32)
    slab = slab.at[row_w1:row_w1 + d_in, 0:d_hid].set(w1t)
    slab = slab.at[row_b1, 0:d_hid].set(b1)
    slab = slab.at[row_w2:row_w2 + d_hid, 0:d_out].set(w_cc.T)
    slab = slab.at[row_b2, 0:d_out].set(b_cc)

    return dict(
        slab=slab, slab_w=slab_w,
        d_in=d_in, mc_out=d_m, d_out=d_out,
        row_w1=row_w1, row_b1=row_b1, row_w2=row_w2, row_b2=row_b2,
    )


def qnet_forward(x, params, *, trim=True):
    """y = sigmoid(cc(cat(relu(mc(x)), tanh(lc(x))))) — torch QNet.forward.

    With trim=False the raw lane-padded (B, 128) slab is returned (valid data
    in the first `d_out` lanes, 0.5 elsewhere), letting a downstream consumer
    skip the wrapper-side slice on the hot path.
    """
    batch = x.shape[0]
    kernel = functools.partial(
        _qnet_kernel,
        mc_out=params["mc_out"], d_in=params["d_in"], slab_w=params["slab_w"],
        row_w1=params["row_w1"], row_b1=params["row_b1"],
        row_w2=params["row_w2"], row_b2=params["row_b2"],
    )
    vmem = pl.BlockSpec(memory_space=pltpu.MemorySpace.VMEM)
    y_pad = pl.pallas_call(
        kernel,
        out_shape=jax.ShapeDtypeStruct((batch, params["slab_w"]), x.dtype),
        in_specs=[vmem, vmem],
        out_specs=vmem,
    )(x, params["slab"])

    if trim:
        return y_pad[:, :params["d_out"]]
    return y_pad


if __name__ == "__main__":
    key = jax.random.PRNGKey(0)
    ks = jax.random.split(key, 7)

    # QNet sizes: q is (in_features, mc_out), q_strs is (in_features, lc_out).
    in_features, mc_out, lc_out = 32, 16, 16
    batch = 8  # one full f32 sublane tile

    x = jax.random.normal(ks[0], (batch, in_features), dtype=jnp.float32)

    def linear_init(kw, kb, fan_out, fan_in):
        # Mimic nn.Linear default init: U(-1/sqrt(fan_in), 1/sqrt(fan_in)).
        bound = 1.0 / (fan_in ** 0.5)
        w = jax.random.uniform(kw, (fan_out, fan_in), jnp.float32, -bound, bound)
        b = jax.random.uniform(kb, (fan_out,), jnp.float32, -bound, bound)
        return w, b

    w_mc, b_mc = linear_init(ks[1], ks[2], mc_out, in_features)
    w_lc, b_lc = linear_init(ks[3], ks[4], lc_out, in_features)
    w_cc, b_cc = linear_init(ks[5], ks[6], mc_out, mc_out + lc_out)

    params = pack_qnet_params(w_mc, b_mc, w_lc, b_lc, w_cc, b_cc)

    y = qnet_forward(x, params)          # torch-shaped (batch, mc_out) output
    jax.block_until_ready(y)

    # Plain-JAX reference of the same math (torch semantics).
    m_ref = jnp.maximum(x @ w_mc.T + b_mc, 0.0)
    l_ref = jnp.tanh(x @ w_lc.T + b_lc)
    y_ref = jax.nn.sigmoid(jnp.concatenate([m_ref, l_ref], axis=1) @ w_cc.T + b_cc)

    assert y.shape == (batch, mc_out)
    assert jnp.allclose(y, y_ref, atol=1e-5, rtol=1e-5)

    # Padded (hot-path) form: first d_out lanes valid, rest sigmoid(0)=0.5.
    y_pad = qnet_forward(x, params, trim=False)
    jax.block_until_ready(y_pad)
    assert jnp.allclose(y_pad[:, :mc_out], y_ref, atol=1e-5, rtol=1e-5)
    assert jnp.allclose(y_pad[:, mc_out:], 0.5, atol=1e-6)

    print("KERNEL_OK")
</pallas_src>

<mosaic_0001>
module attributes {stable_mosaic.version = 11 : i64} {
  func.func @_qnet_kernel(%arg0: memref<8x32xf32, #tpu.memory_space<vmem>>, %arg1: memref<176x128xf32, #tpu.memory_space<vmem>>, %arg2: memref<8x128xf32, #tpu.memory_space<vmem>>) attributes {dimension_semantics = [], scalar_prefetch = 0 : i64, scratch_operands = 0 : i64, tpu.core_type = #tpu.core_type<tc>} {
    %c0 = arith.constant 0 : index
    %c0_0 = arith.constant 0 : index
    %0 = vector.load %arg1[%c0, %c0_0] : memref<176x128xf32, #tpu.memory_space<vmem>>, vector<32x128xf32>
    %c32 = arith.constant 32 : index
    %c0_1 = arith.constant 0 : index
    %1 = vector.load %arg1[%c32, %c0_1] : memref<176x128xf32, #tpu.memory_space<vmem>>, vector<1x128xf32>
    %c40 = arith.constant 40 : index
    %c0_2 = arith.constant 0 : index
    %2 = vector.load %arg1[%c40, %c0_2] : memref<176x128xf32, #tpu.memory_space<vmem>>, vector<128x128xf32>
    %c168 = arith.constant 168 : index
    %c0_3 = arith.constant 0 : index
    %3 = vector.load %arg1[%c168, %c0_3] : memref<176x128xf32, #tpu.memory_space<vmem>>, vector<1x128xf32>
    %c0_4 = arith.constant 0 : index
    %c0_5 = arith.constant 0 : index
    %4 = vector.load %arg0[%c0_4, %c0_5] : memref<8x32xf32, #tpu.memory_space<vmem>>, vector<8x32xf32>
    %cst = arith.constant dense<0.000000e+00> : vector<8x128xf32>
    %5 = tpu.matmul %4, %0, %cst {dimension_numbers = #tpu.dot_dimension_numbers<[1], [0], [0], [1], [0, 0, 1, 1], [], []>} : vector<8x32xf32>, vector<32x128xf32>, vector<8x128xf32> -> vector<8x128xf32>
    %6 = vector.broadcast %1 : vector<1x128xf32> to vector<8x128xf32>
    %7 = arith.addf %5, %6 : vector<8x128xf32>
    %8 = tpu.iota {dimensions = array<i32: 1>} : vector<8x128xi32>
    %c16_i32 = arith.constant 16 : i32
    %9 = vector.broadcast %c16_i32 : i32 to vector<8x128xi32>
    %10 = arith.cmpi slt, %8, %9 : vector<8x128xi32>
    %cst_6 = arith.constant 0.000000e+00 : f32
    %11 = vector.broadcast %cst_6 : f32 to vector<8x128xf32>
    %12 = arith.maximumf %7, %11 : vector<8x128xf32>
    %13 = math.tanh %7 : vector<8x128xf32>
    %14 = arith.select %10, %12, %13 : vector<8x128xi1>, vector<8x128xf32>
    %cst_7 = arith.constant dense<0.000000e+00> : vector<8x128xf32>
    %15 = tpu.matmul %14, %2, %cst_7 {dimension_numbers = #tpu.dot_dimension_numbers<[1], [0], [0], [1], [0, 0, 1, 1], [], []>} : vector<8x128xf32>, vector<128x128xf32>, vector<8x128xf32> -> vector<8x128xf32>
    %16 = vector.broadcast %3 : vector<1x128xf32> to vector<8x128xf32>
    %17 = arith.addf %15, %16 : vector<8x128xf32>
    %18 = arith.negf %17 : vector<8x128xf32>
    %19 = math.exp %18 : vector<8x128xf32>
    %cst_8 = arith.constant 1.000000e+00 : f32
    %20 = vector.broadcast %cst_8 : f32 to vector<8x128xf32>
    %21 = arith.addf %20, %19 : vector<8x128xf32>
    %22 = arith.divf %20, %21 : vector<8x128xf32>
    %c0_9 = arith.constant 0 : index
    %c0_10 = arith.constant 0 : index
    %23 = vector.load %arg2[%c0_9, %c0_10] : memref<8x128xf32, #tpu.memory_space<vmem>>, vector<8x128xf32>
    tpu.vector_store %arg2[%c0_9, %c0_10], %22 {strides = array<i32>} : memref<8x128xf32, #tpu.memory_space<vmem>>, vector<8x128xf32>,
    return
  }
}

</mosaic_0001>

<bundles_post_ra>
// kernel: tpu_custom_call.1
= control target key start
LH: loop header
LB: loop body
LE: loop exit
PB: predicated region body
PF: predicated region fallthrough
CT: control target
= control target key end

     0   :  { %7 = vsyncpa [#allocation3], 0  ;;  %s277_s0 = inlined_call_operand.hbm [shape: f32[8,32], index: 0, kind: input, shape index: {}]   ;;  %s278_s1 = inlined_call_operand.hbm [shape: f32[176,128], index: 1, kind: input, shape index: {}]   ;;  %s279_s2 = inlined_call_operand.hbm [shape: f32[8,128], index: 2, kind: output, shape index: {}]  }
   0x1   :  { %8 = vsyncpa [#allocation6], 0 }
   0x2   :  { %9 = vsyncpa [#allocation4], 0  ;;  %s15_s11 = sshll.u32 %s277_s0, 4  ;;  %s248_s12 = smov [#allocation2]   ;;  %s16_s11 = int_to_ptr.hbm [resolvable:$true] %s15_s11 }
   0x3   :  { %s17_s13 = sshll.u32 %s248_s12, 4  ;;  %s25_s16 = sshll.u32 %s278_s1, 4  ;;  %s18_s13 = int_to_ptr.vmem [resolvable:$true] %s17_s13  ;;  %s26_s16 = int_to_ptr.hbm [resolvable:$true] %s25_s16 }
   0x4   :  { %20 = dma.hbm_to_vmem [thread:$0]  %s16_s11, 128, %s18_s13, [#allocation3]  }
   0x5   :  { %s249_s17 = smov [#allocation5]   ;;  %s250_s19 = smov 128  }
   0x6   :  { %s27_s18 = sshll.u32 %s249_s17, 4  ;;  %s251_s20 = smov 8   ;;  %s28_s18 = int_to_ptr.vmem [resolvable:$true] %s27_s18 }
   0x7   :  { %33 = dma.hbm_to_vmem [thread:$0]  %s26_s16, 2816, %s28_s18, [#allocation6], %s250_s19, %s250_s19, %s251_s20  }
   0x8   :  { %242 = dma.done.wait [#allocation3], 128  }
   0x9   :  { %243 = vsyncadd [#allocation3], 4294967168 }
   0xa   :  { %244 = dma.done.wait [#allocation6], 2816  }
   0xb   :  { %245 = vsyncadd [#allocation6], 4294964480  ;;  %v45_v0 = vld [vmem:[#allocation5 + $0x18] sm:$0xff]  ;;  %v44_v1 = vld [vmem:[#allocation5 + $0x10] sm:$0xff]  ;;  %vm66_vm0 = vcmask 261120   ;;  %v90_v22 = vlaneseq  ;;  %s252_s0 = smov [#allocation7]  }
   0xc   :  { %82 = vmatpush.msra.mxu0 %v45_v0  ;;  %v62_v2 = vld [vmem:[#allocation5 + $0xa0] sm:$0xff]  ;;  %v43_v3 = vld [vmem:[#allocation5 + $0x8] sm:$0xff]  ;;  %v61_v4 = vld [vmem:[#allocation5 + $0x98] sm:$0xff]  ;;  %s142_s1 = sshll.u32 %s252_s0, 4  ;;  %s144_s23 = sshll.u32 %s279_s2, 4  ;;  %s143_s1 = int_to_ptr.vmem [resolvable:$true] %s142_s1  ;;  %s145_s23 = int_to_ptr.hbm [resolvable:$true] %s144_s23 }
   0xd   :  { %97 = vmatpush.msra.mxu1 %v62_v2  ;;  %v60_v5 = vld [vmem:[#allocation5 + $0x90] sm:$0xff]  ;;  %v42_v6 = vld [vmem:[#allocation5] sm:$0xff]  ;;  %v64_v7 = vld [vmem:[#allocation2] sm:$0xff]  ;;  %v91_v25 = vand.u32 127, %v90_v22 }
   0xe   :  { %83 = vmatpush.msra.mxu0 %v44_v1  ;;  %v59_v8 = vld [vmem:[#allocation5 + $0x88] sm:$0xff]  ;;  %v58_v9 = vld [vmem:[#allocation5 + $0x80] sm:$0xff]  ;;  %v57_v10 = vld [vmem:[#allocation5 + $0x78] sm:$0xff] }
   0xf   :  { %98 = vmatpush.msra.mxu1 %v61_v4  ;;  %v56_v11 = vld [vmem:[#allocation5 + $0x70] sm:$0xff]  ;;  %v55_v12 = vld [vmem:[#allocation5 + $0x68] sm:$0xff]  ;;  %v54_v13 = vld [vmem:[#allocation5 + $0x60] sm:$0xff]  ;;  %vm92_vm1 = vcmp.lt.s32.totalorder %v91_v25, 16 }
  0x10   :  { %84 = vmatpush.msra.mxu0 %v43_v3  ;;  %v53_v14 = vld [vmem:[#allocation5 + $0x58] sm:$0xff]  ;;  %v52_v15 = vld [vmem:[#allocation5 + $0x50] sm:$0xff]  ;;  %v51_v16 = vld [vmem:[#allocation5 + $0x48] sm:$0xff] }
  0x11   :  { %99 = vmatpush.msra.mxu1 %v60_v5  ;;  %v50_v17 = vld [vmem:[#allocation5 + $0x40] sm:$0xff]  ;;  %v49_v18 = vld [vmem:[#allocation5 + $0x38] sm:$0xff]  ;;  %v48_v19 = vld [vmem:[#allocation5 + $0x30] sm:$0xff] }
  0x12   :  { %85 = vmatpush.msra.mxu0 %v42_v6  ;;  %v47_v20 = vld [vmem:[#allocation5 + $0x28] sm:$0xff]  ;;  %v162_v21 = vld [vmem:[#allocation5 + $0x20] ss:$0 sm:$0xff] }
  0x13   :  { %155 = vmatmul.msk.f32.vlgmr.msra.gmra.mxu0 %vm66_vm0, %v64_v7  ;;  %100 = vmatpush.msra.mxu1 %v59_v8  ;;  %v163_v29 = vld [vmem:[#allocation5 + $0xa8] ss:$0 sm:$0xff] }
  0x15   :  { %101 = vmatpush.msra.mxu1 %v58_v9 }
  0x17   :  { %102 = vmatpush.msra.mxu1 %v57_v10 }
  0x19   :  { %103 = vmatpush.msra.mxu1 %v56_v11 }
  0x1b   :  { %104 = vmatpush.msra.mxu1 %v55_v12 }
  0x1d   :  { %105 = vmatpush.msra.mxu1 %v54_v13 }
  0x1f   :  { %106 = vmatpush.msra.mxu1 %v53_v14 }
  0x21   :  { %107 = vmatpush.msra.mxu1 %v52_v15 }
  0x23   :  { %108 = vmatpush.msra.mxu1 %v51_v16 }
  0x25   :  { %109 = vmatpush.msra.mxu1 %v50_v17 }
  0x27   :  { %110 = vmatpush.msra.mxu1 %v49_v18 }
  0x29   :  { %111 = vmatpush.msra.mxu1 %v48_v19 }
  0x2b   :  { %112 = vmatpush.msra.mxu1 %v47_v20 }
  0x90   :  { %v87_v23 = vpop.f32.mrf.mxu0 }
  0x91   :  { %v88_v24 = vadd.f32 %v162_v21, %v87_v23 }
  0x93   :  { %164 = vtanh.f32 %v88_v24  ;;  %v93_v26 = vmax.f32 %v88_v24, 0.0 }
  0x99   :  { %v165_v27 = vpop.eup %164 }
  0x9a   :  { %v95_v28 = vsel %vm92_vm1, %v93_v26, %v165_v27 }
  0x9b   :  { %113 = vmatmul.f32.vlgmr.msra.gmra.mxu1 %v95_v28 }
 0x118   :  { %v114_v30 = vpop.f32.mrf.mxu1 }
 0x119   :  { %v115_v31 = vadd.f32 %v163_v29, %v114_v30 }
 0x11b   :  { %v156_v32 = vmul.f32 -1.442695, %v115_v31 }
 0x11d   :  { %166 = vpow2.f32 %v156_v32 }
 0x123   :  { %v167_v33 = vpop.eup %166 }
 0x124   :  { %v120_v34 = vadd.f32 1.0, %v167_v33 }
 0x126   :  { %168 = vrcp.f32 %v120_v34  ;;  %v132_v38 = vand.u32 2147483648, %v120_v34  ;;  %v130_v40 = vand.u32 2147483647, %v120_v34  ;;  %vm126_vm3 = vweird.f32 %v120_v34 }
 0x128   :  { %v133_v42 = vor.u32 1.1754944e-38, %v132_v38  ;;  %vm131_vm5 = vcmp.eq.f32.partialorder %v130_v40, 8.507059e+37 }
 0x12c   :  { %v169_v35 = vpop.eup %168 }
 0x12d   :  { %v122_v36 = vmul.f32 %v169_v35, %v120_v34  ;;  %vm127_vm2 = vweird.f32 %v169_v35 }
 0x12e   :  { %vm128_vm4 = vmor %vm126_vm3, %vm127_vm2 }
 0x12f   :  { %v123_v37 = vsub.f32 1.0, %v122_v36 }
 0x131   :  { %v124_v39 = vmul.f32 %v169_v35, %v123_v37 }
 0x133   :  { %v125_v41 = vadd.f32 %v169_v35, %v124_v39 }
 0x135   :  { %v129_v43 = vsel %vm128_vm4, %v169_v35, %v125_v41 }
 0x136   :  { %v134_v44 = vsel %vm131_vm5, %v133_v42, %v129_v43 }
 0x137   :  { %136 = vst [vmem:[#allocation7] sm:$0xff] %v134_v44 }
 0x138   :  { %147 = dma.vmem_to_hbm [thread:$0]  %s143_s1, 128, %s145_s23, [#allocation4]  }
 0x139   :  { %246 = dma.done.wait [#allocation4], 128  }
 0x13a   :  { %247 = vsyncadd [#allocation4], 4294967168 }
 0x13b   :  { %152 = vsyncpa [#allocation3], 1 }
 0x13c   :  { %153 = vsyncpa [#allocation6], 1 }
 0x13d   :  { %154 = vsyncpa [#allocation4], 1 }

</bundles_post_ra>
